<compile_context>
chip_gen: v5e
topology: v5e:2x2
jax: 0.10.0
libtpu: 0.0.40
codegen_flags: <defaults>
</compile_context>

<pallas_src>
import math
import jax
import jax.numpy as jnp
from jax.experimental import pallas as pl
from jax.experimental.pallas import tpu as pltpu

# ----------------------------- problem sizes --------------------------------
N = 32                      # number of nodes (batch)
MUL_IN_S, MUL_IN_V = 16, 8  # irreps_in  = "16x0e + 8x1o"
RATIO = 4                   # ratio_adapter_down
MUL_DN_S, MUL_DN_V = MUL_IN_S // RATIO, MUL_IN_V // RATIO   # "4x0e + 2x1o"
MUL_OUT_S, MUL_OUT_V = MUL_IN_S, MUL_IN_V                   # irreps_out = irreps_in
D_IN = MUL_IN_S + 3 * MUL_IN_V          # 40
D_DN = MUL_DN_S + 3 * MUL_DN_V          # 10
D_OUT = MUL_OUT_S + 3 * MUL_OUT_V       # 40
EPS = 1e-5                              # e3nn BatchNorm eps
SILU_C = 1.6791767923989418             # e3nn normalize2mom constant for SiLU


def _silu(x):
    return x * jax.nn.sigmoid(x)


# ------------------------ parameter preprocessing ----------------------------
def prepare_params(wds, wdv, wus, wuv, bnw_s, bnb_s, bnw_v):
    """Fold o3.Linear 1/sqrt(fan_in) scales + SILU_C into the weights and build
    the block-diagonal (kron with I3 for the 1o block) dense matrices so the
    kernel runs on the raw e3nn-flattened [N, 40] embedding."""
    i3 = jnp.eye(3, dtype=jnp.float32)
    wds_s = wds * (1.0 / math.sqrt(MUL_IN_S))
    wdv_s = wdv * (1.0 / math.sqrt(MUL_IN_V))
    wus_s = wus * (SILU_C / math.sqrt(MUL_DN_S))   # SILU_C commutes into linear_up
    wuv_s = wuv * (1.0 / math.sqrt(MUL_DN_V))

    w_down = jnp.zeros((D_IN, D_DN), jnp.float32)
    w_down = w_down.at[:MUL_IN_S, :MUL_DN_S].set(wds_s)
    w_down = w_down.at[MUL_IN_S:, MUL_DN_S:].set(jnp.kron(wdv_s, i3))

    w_up = jnp.zeros((D_DN, D_OUT), jnp.float32)
    w_up = w_up.at[:MUL_DN_S, :MUL_OUT_S].set(wus_s)
    w_up = w_up.at[MUL_DN_S:, MUL_OUT_S:].set(jnp.kron(wuv_s, i3))
    return w_down, w_up, bnw_s, bnb_s, bnw_v


# ------------------------------- kernels --------------------------------------
def _fwd_stats_kernel(x_ref, wdn_ref, wup_ref, y_ref, sum_ref, ssq_ref):
    # Pass 1: fused linear_down -> SiLU(0e channels) -> linear_up, plus
    # accumulation of per-channel batch sum / sum-of-squares for BatchNorm.
    @pl.when(pl.program_id(0) == 0)
    def _():
        sum_ref[...] = jnp.zeros_like(sum_ref)
        ssq_ref[...] = jnp.zeros_like(ssq_ref)

    h = jnp.dot(x_ref[...], wdn_ref[...], preferred_element_type=jnp.float32)
    col = jax.lax.broadcasted_iota(jnp.int32, h.shape, 1)
    h = jnp.where(col < MUL_DN_S, h * jax.nn.sigmoid(h), h)   # SiLU on 0e only
    y = jnp.dot(h, wup_ref[...], preferred_element_type=jnp.float32)

    y_ref[...] = y
    sum_ref[...] += jnp.sum(y, axis=0, keepdims=True)
    ssq_ref[...] += jnp.sum(y * y, axis=0, keepdims=True)


def _bn_apply_kernel(y_ref, scale_ref, bias_ref, o_ref):
    # Pass 2: y * scale + bias (per-channel affine normalization).
    o_ref[...] = y_ref[...] * scale_ref[...] + bias_ref[...]


# ------------------------------- wrapper --------------------------------------
def _choose_tile(n):
    if n >= 1024:
        return 1024
    return max(8, ((n + 7) // 8) * 8)


@jax.jit
def adapter_pallas(x, w_down, w_up, bnw_s, bnb_s, bnw_v):
    n = x.shape[0]
    tile = _choose_tile(n)
    n_pad = ((n + tile - 1) // tile) * tile
    x_p = x if n_pad == n else jnp.pad(x, ((0, n_pad - n), (0, 0)))
    grid = (n_pad // tile,)

    y, ysum, yssq = pl.pallas_call(
        _fwd_stats_kernel,
        out_shape=(jax.ShapeDtypeStruct((n_pad, D_OUT), jnp.float32),
                   jax.ShapeDtypeStruct((1, D_OUT), jnp.float32),
                   jax.ShapeDtypeStruct((1, D_OUT), jnp.float32)),
        grid_spec=pltpu.PrefetchScalarGridSpec(
            num_scalar_prefetch=0,
            grid=grid,
            in_specs=[pl.BlockSpec((tile, D_IN), lambda i: (i, 0)),
                      pl.BlockSpec((D_IN, D_DN), lambda i: (0, 0)),
                      pl.BlockSpec((D_DN, D_OUT), lambda i: (0, 0))],
            out_specs=(pl.BlockSpec((tile, D_OUT), lambda i: (i, 0)),
                       pl.BlockSpec((1, D_OUT), lambda i: (0, 0)),
                       pl.BlockSpec((1, D_OUT), lambda i: (0, 0)))),
        compiler_params=pltpu.CompilerParams(
            dimension_semantics=("arbitrary",)),   # resident stats accumulator
    )(x_p, w_down, w_up)

    # Tiny (40-channel) stats -> per-channel scale/bias; fused by jit.
    # e3nn BatchNorm training mode, normalization='component', reduce='mean':
    #   0e: center by batch mean, scale by rsqrt(var + eps), affine w,b
    #   1o: scale by rsqrt(mean over (batch, m) of squared components + eps) * w
    inv_n = 1.0 / n
    s, ss = ysum[0], yssq[0]
    mean_s = s[:MUL_OUT_S] * inv_n
    var_s = ss[:MUL_OUT_S] * inv_n - mean_s * mean_s
    scale_s = bnw_s * jax.lax.rsqrt(var_s + EPS)
    bias_s = bnb_s - mean_s * scale_s
    norm_v = ss[MUL_OUT_S:].reshape(MUL_OUT_V, 3).sum(-1) * (inv_n / 3.0)
    scale_v = jnp.repeat(bnw_v * jax.lax.rsqrt(norm_v + EPS), 3)
    scale = jnp.concatenate([scale_s, scale_v])[None, :]
    bias = jnp.concatenate([bias_s, jnp.zeros_like(scale_v)])[None, :]

    out = pl.pallas_call(
        _bn_apply_kernel,
        out_shape=jax.ShapeDtypeStruct((n_pad, D_OUT), jnp.float32),
        grid_spec=pltpu.PrefetchScalarGridSpec(
            num_scalar_prefetch=0,
            grid=grid,
            in_specs=[pl.BlockSpec((tile, D_OUT), lambda i: (i, 0)),
                      pl.BlockSpec((1, D_OUT), lambda i: (0, 0)),
                      pl.BlockSpec((1, D_OUT), lambda i: (0, 0))],
            out_specs=pl.BlockSpec((tile, D_OUT), lambda i: (i, 0))),
        compiler_params=pltpu.CompilerParams(
            dimension_semantics=("parallel",)),
    )(y, scale, bias)

    return out[:n] if n_pad != n else out


# ------------------------- pure-JAX reference ---------------------------------
def adapter_ref(x, raw_params):
    wds, wdv, wus, wuv, bnw_s, bnb_s, bnw_v = raw_params
    n = x.shape[0]
    xs = x[:, :MUL_IN_S]
    xv = x[:, MUL_IN_S:].reshape(n, MUL_IN_V, 3)

    hs = SILU_C * _silu(xs @ wds / math.sqrt(MUL_IN_S))
    hv = jnp.einsum('nmj,mk->nkj', xv, wdv) / math.sqrt(MUL_IN_V)

    ys = (hs @ wus) / math.sqrt(MUL_DN_S)
    yv = jnp.einsum('nkj,ko->noj', hv, wuv) / math.sqrt(MUL_DN_V)

    mean_s = ys.mean(0)
    cs = ys - mean_s
    var_s = (cs * cs).mean(0)
    os_ = cs * jax.lax.rsqrt(var_s + EPS) * bnw_s + bnb_s

    norm_v = (yv * yv).mean(-1).mean(0)                       # [MUL_OUT_V]
    ov = yv * (bnw_v * jax.lax.rsqrt(norm_v + EPS))[None, :, None]
    return jnp.concatenate([os_, ov.reshape(n, 3 * MUL_OUT_V)], axis=1)


# --------------------------------- main ---------------------------------------
if __name__ == "__main__":
    key = jax.random.PRNGKey(0)
    kx, k1, k2, k3, k4, k5, k6, k7 = jax.random.split(key, 8)

    # synthetic e3nn-style parameters (o3.Linear weights ~ N(0,1))
    wds = jax.random.normal(k1, (MUL_IN_S, MUL_DN_S), jnp.float32)
    wdv = jax.random.normal(k2, (MUL_IN_V, MUL_DN_V), jnp.float32)
    wus = jax.random.normal(k3, (MUL_DN_S, MUL_OUT_S), jnp.float32)
    wuv = jax.random.normal(k4, (MUL_DN_V, MUL_OUT_V), jnp.float32)
    bnw_s = 1.0 + 0.1 * jax.random.normal(k5, (MUL_OUT_S,), jnp.float32)
    bnb_s = 0.1 * jax.random.normal(k6, (MUL_OUT_S,), jnp.float32)
    bnw_v = 1.0 + 0.1 * jax.random.normal(k7, (MUL_OUT_V,), jnp.float32)
    raw_params = (wds, wdv, wus, wuv, bnw_s, bnb_s, bnw_v)

    # one-time parameter folding (scales + block-diagonal/kron assembly)
    w_down, w_up, bnw_s_p, bnb_s_p, bnw_v_p = prepare_params(*raw_params)

    x = jax.random.normal(kx, (N, D_IN), jnp.float32)

    out = jax.block_until_ready(
        adapter_pallas(x, w_down, w_up, bnw_s_p, bnb_s_p, bnw_v_p))
    ref = jax.block_until_ready(adapter_ref(x, raw_params))

    assert out.shape == (N, D_IN) and out.dtype == jnp.float32
    err = float(jnp.max(jnp.abs(out - ref)))
    assert jnp.allclose(out, ref, atol=2e-3, rtol=2e-3), err
    print("KERNEL_OK")
</pallas_src>

<mosaic_0001>
module attributes {stable_mosaic.version = 11 : i64} {
  func.func @_fwd_stats_kernel(%arg0: i32, %arg1: memref<32x40xf32, #tpu.memory_space<vmem>>, %arg2: memref<40x10xf32, #tpu.memory_space<vmem>>, %arg3: memref<10x40xf32, #tpu.memory_space<vmem>>, %arg4: memref<32x40xf32, #tpu.memory_space<vmem>>, %arg5: memref<1x40xf32, #tpu.memory_space<vmem>>, %arg6: memref<1x40xf32, #tpu.memory_space<vmem>>) attributes {dimension_semantics = [#tpu.dimension_semantics<arbitrary>], iteration_bounds = array<i64: 1>, scalar_prefetch = 0 : i64, scratch_operands = 0 : i64, tpu.core_type = #tpu.core_type<tc>, window_params = [{transform_indices = @transform_0, window_bounds = array<i64: 32, 40>}, {pipeline_mode = #tpu.pipeline_mode<synchronous>, transform_indices = @transform_1, window_bounds = array<i64: 40, 10>}, {pipeline_mode = #tpu.pipeline_mode<synchronous>, transform_indices = @transform_2, window_bounds = array<i64: 10, 40>}, {transform_indices = @transform_3, window_bounds = array<i64: 32, 40>}, {pipeline_mode = #tpu.pipeline_mode<synchronous>, transform_indices = @transform_4, window_bounds = array<i64: 1, 40>}, {pipeline_mode = #tpu.pipeline_mode<synchronous>, transform_indices = @transform_5, window_bounds = array<i64: 1, 40>}]} {
    %c0_i32 = arith.constant 0 : i32
    %0 = arith.cmpi eq, %arg0, %c0_i32 : i32
    %1 = arith.extui %0 : i1 to i32
    %c0_i32_0 = arith.constant 0 : i32
    %2 = arith.cmpi ne, %1, %c0_i32_0 : i32
    scf.if %2 {
      %cst_20 = arith.constant 0.000000e+00 : f32
      %30 = vector.broadcast %cst_20 : f32 to vector<1x40xf32>
      %c0_21 = arith.constant 0 : index
      %c0_22 = arith.constant 0 : index
      %31 = vector.load %arg5[%c0_21, %c0_22] : memref<1x40xf32, #tpu.memory_space<vmem>>, vector<1x40xf32>
      tpu.vector_store %arg5[%c0_21, %c0_22], %30 {strides = array<i32>} : memref<1x40xf32, #tpu.memory_space<vmem>>, vector<1x40xf32>,
      %cst_23 = arith.constant 0.000000e+00 : f32
      %32 = vector.broadcast %cst_23 : f32 to vector<1x40xf32>
      %c0_24 = arith.constant 0 : index
      %c0_25 = arith.constant 0 : index
      %33 = vector.load %arg6[%c0_24, %c0_25] : memref<1x40xf32, #tpu.memory_space<vmem>>, vector<1x40xf32>
      tpu.vector_store %arg6[%c0_24, %c0_25], %32 {strides = array<i32>} : memref<1x40xf32, #tpu.memory_space<vmem>>, vector<1x40xf32>,
    } else {
    }
    %c0 = arith.constant 0 : index
    %c0_1 = arith.constant 0 : index
    %3 = vector.load %arg1[%c0, %c0_1] : memref<32x40xf32, #tpu.memory_space<vmem>>, vector<32x40xf32>
    %c0_2 = arith.constant 0 : index
    %c0_3 = arith.constant 0 : index
    %4 = vector.load %arg2[%c0_2, %c0_3] : memref<40x10xf32, #tpu.memory_space<vmem>>, vector<40x10xf32>
    %cst = arith.constant dense<0.000000e+00> : vector<32x10xf32>
    %5 = tpu.matmul %3, %4, %cst {dimension_numbers = #tpu.dot_dimension_numbers<[1], [0], [0], [1], [0, 0, 1, 1], [], []>} : vector<32x40xf32>, vector<40x10xf32>, vector<32x10xf32> -> vector<32x10xf32>
    %6 = tpu.iota {dimensions = array<i32: 1>} : vector<32x10xi32>
    %c4_i32 = arith.constant 4 : i32
    %7 = vector.broadcast %c4_i32 : i32 to vector<32x10xi32>
    %8 = arith.cmpi slt, %6, %7 : vector<32x10xi32>
    %9 = arith.negf %5 : vector<32x10xf32>
    %10 = math.exp %9 : vector<32x10xf32>
    %cst_4 = arith.constant 1.000000e+00 : f32
    %11 = vector.broadcast %cst_4 : f32 to vector<32x10xf32>
    %12 = arith.addf %11, %10 : vector<32x10xf32>
    %13 = arith.divf %11, %12 : vector<32x10xf32>
    %14 = arith.mulf %5, %13 : vector<32x10xf32>
    %15 = arith.select %8, %14, %5 : vector<32x10xi1>, vector<32x10xf32>
    %c0_5 = arith.constant 0 : index
    %c0_6 = arith.constant 0 : index
    %16 = vector.load %arg3[%c0_5, %c0_6] : memref<10x40xf32, #tpu.memory_space<vmem>>, vector<10x40xf32>
    %cst_7 = arith.constant dense<0.000000e+00> : vector<32x40xf32>
    %17 = tpu.matmul %15, %16, %cst_7 {dimension_numbers = #tpu.dot_dimension_numbers<[1], [0], [0], [1], [0, 0, 1, 1], [], []>} : vector<32x10xf32>, vector<10x40xf32>, vector<32x40xf32> -> vector<32x40xf32>
    %c0_8 = arith.constant 0 : index
    %c0_9 = arith.constant 0 : index
    %18 = vector.load %arg4[%c0_8, %c0_9] : memref<32x40xf32, #tpu.memory_space<vmem>>, vector<32x40xf32>
    tpu.vector_store %arg4[%c0_8, %c0_9], %17 {strides = array<i32>} : memref<32x40xf32, #tpu.memory_space<vmem>>, vector<32x40xf32>,
    %c0_10 = arith.constant 0 : index
    %c0_11 = arith.constant 0 : index
    %19 = vector.load %arg5[%c0_10, %c0_11] : memref<1x40xf32, #tpu.memory_space<vmem>>, vector<1x40xf32>
    %cst_12 = arith.constant dense<0.000000e+00> : vector<40xf32>
    %20 = vector.multi_reduction <add>, %17, %cst_12 [0] : vector<32x40xf32> to vector<40xf32>
    %21 = vector.shape_cast %20 : vector<40xf32> to vector<1x40xf32>
    %22 = arith.addf %19, %21 : vector<1x40xf32>
    %c0_13 = arith.constant 0 : index
    %c0_14 = arith.constant 0 : index
    %23 = vector.load %arg5[%c0_13, %c0_14] : memref<1x40xf32, #tpu.memory_space<vmem>>, vector<1x40xf32>
    tpu.vector_store %arg5[%c0_13, %c0_14], %22 {strides = array<i32>} : memref<1x40xf32, #tpu.memory_space<vmem>>, vector<1x40xf32>,
    %c0_15 = arith.constant 0 : index
    %c0_16 = arith.constant 0 : index
    %24 = vector.load %arg6[%c0_15, %c0_16] : memref<1x40xf32, #tpu.memory_space<vmem>>, vector<1x40xf32>
    %25 = arith.mulf %17, %17 : vector<32x40xf32>
    %cst_17 = arith.constant dense<0.000000e+00> : vector<40xf32>
    %26 = vector.multi_reduction <add>, %25, %cst_17 [0] : vector<32x40xf32> to vector<40xf32>
    %27 = vector.shape_cast %26 : vector<40xf32> to vector<1x40xf32>
    %28 = arith.addf %24, %27 : vector<1x40xf32>
    %c0_18 = arith.constant 0 : index
    %c0_19 = arith.constant 0 : index
    %29 = vector.load %arg6[%c0_18, %c0_19] : memref<1x40xf32, #tpu.memory_space<vmem>>, vector<1x40xf32>
    tpu.vector_store %arg6[%c0_18, %c0_19], %28 {strides = array<i32>} : memref<1x40xf32, #tpu.memory_space<vmem>>, vector<1x40xf32>,
    return
  }
  func.func @transform_0(%arg0: i32) -> (i32, i32) {
    %c0_i32 = arith.constant 0 : i32
    %c0_i32_0 = arith.constant 0 : i32
    return %arg0, %c0_i32 : i32, i32
  }
  func.func @transform_1(%arg0: i32) -> (i32, i32) {
    %c0_i32 = arith.constant 0 : i32
    %c0_i32_0 = arith.constant 0 : i32
    %c0_i32_1 = arith.constant 0 : i32
    return %c0_i32, %c0_i32_0 : i32, i32
  }
  func.func @transform_2(%arg0: i32) -> (i32, i32) {
    %c0_i32 = arith.constant 0 : i32
    %c0_i32_0 = arith.constant 0 : i32
    %c0_i32_1 = arith.constant 0 : i32
    return %c0_i32, %c0_i32_0 : i32, i32
  }
  func.func @transform_3(%arg0: i32) -> (i32, i32) {
    %c0_i32 = arith.constant 0 : i32
    %c0_i32_0 = arith.constant 0 : i32
    return %arg0, %c0_i32 : i32, i32
  }
  func.func @transform_4(%arg0: i32) -> (i32, i32) {
    %c0_i32 = arith.constant 0 : i32
    %c0_i32_0 = arith.constant 0 : i32
    %c0_i32_1 = arith.constant 0 : i32
    return %c0_i32, %c0_i32_0 : i32, i32
  }
  func.func @transform_5(%arg0: i32) -> (i32, i32) {
    %c0_i32 = arith.constant 0 : i32
    %c0_i32_0 = arith.constant 0 : i32
    %c0_i32_1 = arith.constant 0 : i32
    return %c0_i32, %c0_i32_0 : i32, i32
  }
}

module attributes {stable_mosaic.version = 11 : i64} {
  func.func @_bn_apply_kernel(%arg0: i32, %arg1: memref<32x40xf32, #tpu.memory_space<vmem>>, %arg2: memref<1x40xf32, #tpu.memory_space<vmem>>, %arg3: memref<1x40xf32, #tpu.memory_space<vmem>>, %arg4: memref<32x40xf32, #tpu.memory_space<vmem>>) attributes {dimension_semantics = [#tpu.dimension_semantics<parallel>], iteration_bounds = array<i64: 1>, scalar_prefetch = 0 : i64, scratch_operands = 0 : i64, tpu.core_type = #tpu.core_type<tc>, window_params = [{transform_indices = @transform_0, window_bounds = array<i64: 32, 40>}, {pipeline_mode = #tpu.pipeline_mode<synchronous>, transform_indices = @transform_1, window_bounds = array<i64: 1, 40>}, {pipeline_mode = #tpu.pipeline_mode<synchronous>, transform_indices = @transform_2, window_bounds = array<i64: 1, 40>}, {transform_indices = @transform_3, window_bounds = array<i64: 32, 40>}]} {
    %c0 = arith.constant 0 : index
    %c0_0 = arith.constant 0 : index
    %0 = vector.load %arg1[%c0, %c0_0] : memref<32x40xf32, #tpu.memory_space<vmem>>, vector<32x40xf32>
    %c0_1 = arith.constant 0 : index
    %c0_2 = arith.constant 0 : index
    %1 = vector.load %arg2[%c0_1, %c0_2] : memref<1x40xf32, #tpu.memory_space<vmem>>, vector<1x40xf32>
    %2 = vector.broadcast %1 : vector<1x40xf32> to vector<32x40xf32>
    %3 = arith.mulf %0, %2 : vector<32x40xf32>
    %c0_3 = arith.constant 0 : index
    %c0_4 = arith.constant 0 : index
    %4 = vector.load %arg3[%c0_3, %c0_4] : memref<1x40xf32, #tpu.memory_space<vmem>>, vector<1x40xf32>
    %5 = vector.broadcast %4 : vector<1x40xf32> to vector<32x40xf32>
    %6 = arith.addf %3, %5 : vector<32x40xf32>
    %c0_5 = arith.constant 0 : index
    %c0_6 = arith.constant 0 : index
    %7 = vector.load %arg4[%c0_5, %c0_6] : memref<32x40xf32, #tpu.memory_space<vmem>>, vector<32x40xf32>
    tpu.vector_store %arg4[%c0_5, %c0_6], %6 {strides = array<i32>} : memref<32x40xf32, #tpu.memory_space<vmem>>, vector<32x40xf32>,
    return
  }
  func.func @transform_0(%arg0: i32) -> (i32, i32) {
    %c0_i32 = arith.constant 0 : i32
    %c0_i32_0 = arith.constant 0 : i32
    return %arg0, %c0_i32 : i32, i32
  }
  func.func @transform_1(%arg0: i32) -> (i32, i32) {
    %c0_i32 = arith.constant 0 : i32
    %c0_i32_0 = arith.constant 0 : i32
    %c0_i32_1 = arith.constant 0 : i32
    return %c0_i32, %c0_i32_0 : i32, i32
  }
  func.func @transform_2(%arg0: i32) -> (i32, i32) {
    %c0_i32 = arith.constant 0 : i32
    %c0_i32_0 = arith.constant 0 : i32
    %c0_i32_1 = arith.constant 0 : i32
    return %c0_i32, %c0_i32_0 : i32, i32
  }
  func.func @transform_3(%arg0: i32) -> (i32, i32) {
    %c0_i32 = arith.constant 0 : i32
    %c0_i32_0 = arith.constant 0 : i32
    return %arg0, %c0_i32 : i32, i32
  }
}

</mosaic_0001>

<bundles_post_ra>
// kernel: adapter_pallas.2
= control target key start
LH: loop header
LB: loop body
LE: loop exit
PB: predicated region body
PF: predicated region fallthrough
CT: control target
= control target key end

     0   :  { %vm33_vm0 = vcmask 326656   ;;  %vm177_vm1 = vcmask 1041408   ;;  %v75_v27 = vlaneseq  ;;  %vm164_vm7 = vcmask 80896   ;;  %s444_s1 = inlined_call_operand.vmem [shape: f32[40,10], index: 1, kind: input, shape index: {}]   ;;  %s445_s0 = inlined_call_operand.vmem [shape: f32[32,40], index: 0, kind: input, shape index: {}]   ;;  %s446_s2 = inlined_call_operand.vmem [shape: f32[10,40], index: 2, kind: input, shape index: {}]   ;;  %s447_s4 = inlined_call_operand.vmem [shape: f32[1,40], index: 4, kind: output, shape index: {1}]   ;;  %s448_s5 = inlined_call_operand.vmem [shape: f32[1,40], index: 5, kind: output, shape index: {2}]   ;;  %s449_s3 = inlined_call_operand.vmem [shape: f32[32,40], index: 3, kind: output, shape index: {0}]  }
   0x1   :  { %v32_v0 = vld [vmem:[%s444_s1 + $0x20] sm:$0xff]  ;;  %v31_v1 = vld [vmem:[%s444_s1 + $0x18] sm:$0xff]  ;;  %v30_v2 = vld [vmem:[%s444_s1 + $0x10] sm:$0xff] }
   0x2   :  { %57 = vmatpush.msra.mxu0 %v32_v0  ;;  %276 = vmatpush.msra.mxu2 %v32_v0  ;;  %v29_v3 = vld [vmem:[%s444_s1 + $0x8] sm:$0xff]  ;;  %v28_v4 = vld [vmem:[%s444_s1] sm:$0xff]  ;;  %v26_v6 = vld [vmem:[%s445_s0 + $0x10] sm:$0xff]  ;;  %v377_v35 = vand.u32 127, %v75_v27 }
   0x3   :  { %v24_v5 = vld [vmem:[%s445_s0] sm:$0xff]  ;;  %v25_v7 = vld [vmem:[%s445_s0 + $0x8] sm:$0xff]  ;;  %v27_v8 = vld [vmem:[%s445_s0 + $0x18] sm:$0xff] }
   0x4   :  { %58 = vmatpush.msra.mxu0 %v31_v1  ;;  %277 = vmatpush.msra.mxu2 %v31_v1  ;;  %v163_v9 = vld [vmem:[%s446_s2 + $0x8] sm:$0x3]  ;;  %v162_v11 = vld [vmem:[%s446_s2] sm:$0xff]  ;;  %vm77_vm6 = vcmp.lt.s32.totalorder %v377_v35, 4 }
   0x5   :  { %271 = vmatpush.msk.msra.mxu1 %vm177_vm1, %v163_v9  ;;  %281 = vmatpush.msk.msra.mxu3 %vm177_vm1, %v163_v9 }
   0x6   :  { %59 = vmatpush.msra.mxu0 %v30_v2  ;;  %278 = vmatpush.msra.mxu2 %v30_v2 }
   0x7   :  { %196 = vmatpush.msra.mxu1 %v162_v11  ;;  %282 = vmatpush.msra.mxu3 %v162_v11 }
   0x8   :  { %60 = vmatpush.msra.mxu0 %v29_v3  ;;  %279 = vmatpush.msra.mxu2 %v29_v3 }
   0xa   :  { %61 = vmatpush.msra.mxu0 %v28_v4  ;;  %280 = vmatpush.msra.mxu2 %v28_v4 }
   0xb   :  { %263 = vmatmul.msk.f32.vlgmr.msra.gmra.mxu0 %vm33_vm0, %v24_v5  ;;  %265 = vmatmul.msk.f32.vlgmr.msra.gmra.mxu2 %vm33_vm0, %v26_v6 }
  0x13   :  { %264 = vmatmul.msk.f32.gmra.mxu0 %vm33_vm0, %v25_v7  ;;  %266 = vmatmul.msk.f32.gmra.mxu2 %vm33_vm0, %v27_v8 }
  0x88   :  { %v63_v10 = vpop.f32.mrf.mxu0 }
  0x89   :  { %v267_v12 = vmul.f32 -1.442695, %v63_v10 }
  0x8b   :  { %284 = vpow2.f32 %v267_v12 }
  0x8e   :  { %v368_v13 = vpop.f32.mrf.mxu2 }
  0x8f   :  { %v269_v14 = vmul.f32 -1.442695, %v368_v13 }
  0x90   :  { %v371_v15 = vpop.f32.mrf.mxu0 }
  0x91   :  { %v285_v16 = vpop.eup %284  ;;  %286 = vpow2.f32 %v269_v14  ;;  %v268_v17 = vmul.f32 -1.442695, %v371_v15  ;;  %v300_v14 = vmov 0.0  }
  0x92   :  { %v90_v18 = vadd.f32 1.0, %v285_v16 }
  0x93   :  { %288 = vpow2.f32 %v268_v17 }
  0x94   :  { %290 = vrcp.f32 %v90_v18  ;;  %v105_v29 = vand.u32 2147483648, %v90_v18  ;;  %v103_v32 = vand.u32 2147483647, %v90_v18  ;;  %vm99_vm3 = vweird.f32 %v90_v18 }
  0x96   :  { %v374_v19 = vpop.f32.mrf.mxu2  ;;  %v106_v38 = vor.u32 1.1754944e-38, %v105_v29  ;;  %vm104_vm5 = vcmp.eq.f32.partialorder %v103_v32, 8.507059e+37 }
  0x97   :  { %v287_v20 = vpop.eup %286  ;;  %v270_v21 = vmul.f32 -1.442695, %v374_v19 }
  0x98   :  { %v92_v22 = vadd.f32 1.0, %v287_v20 }
  0x99   :  { %v289_v23 = vpop.eup %288  ;;  %292 = vpow2.f32 %v270_v21 }
  0x9a   :  { %v291_v24 = vpop.eup %290  ;;  %294 = vrcp.f32 %v92_v22  ;;  %v91_v26 = vadd.f32 1.0, %v289_v23  ;;  %vm129_vm9 = vweird.f32 %v92_v22  ;;  %v135_v55 = vand.u32 2147483648, %v92_v22 }
  0x9b   :  { %v95_v25 = vmul.f32 %v291_v24, %v90_v18  ;;  %vm100_vm2 = vweird.f32 %v291_v24  ;;  %v133_v58 = vand.u32 2147483647, %v92_v22 }
  0x9c   :  { %296 = vrcp.f32 %v91_v26  ;;  %vm101_vm4 = vmor %vm99_vm3, %vm100_vm2  ;;  %v120_v47 = vand.u32 2147483648, %v91_v26  ;;  %v118_v51 = vand.u32 2147483647, %v91_v26  ;;  %vm114_vm11 = vweird.f32 %v91_v26 }
  0x9d   :  { %v96_v28 = vsub.f32 1.0, %v95_v25  ;;  %v136_v0 = vor.u32 1.1754944e-38, %v135_v55  ;;  %vm134_vm15 = vcmp.eq.f32.partialorder %v133_v58, 8.507059e+37 }
  0x9e   :  { %v121_v56 = vor.u32 1.1754944e-38, %v120_v47  ;;  %vm119_vm13 = vcmp.eq.f32.partialorder %v118_v51, 8.507059e+37 }
  0x9f   :  { %v293_v30 = vpop.eup %292  ;;  %v97_v31 = vmul.f32 %v291_v24, %v96_v28 }
  0xa0   :  { %v295_v33 = vpop.eup %294  ;;  %v93_v34 = vadd.f32 1.0, %v293_v30 }
  0xa1   :  { %v98_v36 = vadd.f32 %v291_v24, %v97_v31  ;;  %v125_v37 = vmul.f32 %v295_v33, %v92_v22  ;;  %vm130_vm10 = vweird.f32 %v295_v33 }
  0xa2   :  { %298 = vrcp.f32 %v93_v34  ;;  %v297_v39 = vpop.eup %296  ;;  %vm131_vm14 = vmor %vm129_vm9, %vm130_vm10  ;;  %vm144_vm1 = vweird.f32 %v93_v34  ;;  %v150_v4 = vand.u32 2147483648, %v93_v34  ;;  %v148_v6 = vand.u32 2147483647, %v93_v34 }
  0xa3   :  { %v102_v40 = vsel %vm101_vm4, %v291_v24, %v98_v36  ;;  %v126_v41 = vsub.f32 1.0, %v125_v37  ;;  %v110_v43 = vmul.f32 %v297_v39, %v91_v26  ;;  %vm115_vm8 = vweird.f32 %v297_v39 }
  0xa4   :  { %v107_v42 = vsel %vm104_vm5, %v106_v38, %v102_v40  ;;  %vm116_vm12 = vmor %vm114_vm11, %vm115_vm8  ;;  %v151_v8 = vor.u32 1.1754944e-38, %v150_v4  ;;  %vm149_vm4 = vcmp.eq.f32.partialorder %v148_v6, 8.507059e+37  ;;  %vm21_vm5 = vcmask 319488  }
  0xa5   :  { %v154_v44 = vmul.f32 %v107_v42, %v63_v10  ;;  %v127_v45 = vmul.f32 %v295_v33, %v126_v41  ;;  %v111_v46 = vsub.f32 1.0, %v110_v43  ;;  %22 = vst.msk [vmem:[%s447_s4] sm:$0x1] %vm21_vm5, %v300_v14 }
  0xa6   :  { %23 = vst.msk [vmem:[%s448_s5] sm:$0x1] %vm21_vm5, %v300_v14 }
  0xa7   :  { %v158_v48 = vsel %vm77_vm6, %v154_v44, %v63_v10  ;;  %v112_v50 = vmul.f32 %v297_v39, %v111_v46  ;;  %v128_v53 = vadd.f32 %v295_v33, %v127_v45 }
  0xa8   :  { %v299_v49 = vpop.eup %298  ;;  %272 = vmatmul.msk.f32.vlgmr.msra.gmra.mxu1 %vm164_vm7, %v158_v48 }
  0xa9   :  { %v140_v52 = vmul.f32 %v299_v49, %v93_v34  ;;  %v113_v54 = vadd.f32 %v297_v39, %v112_v50  ;;  %v132_v61 = vsel %vm131_vm14, %v295_v33, %v128_v53  ;;  %vm145_vm2 = vweird.f32 %v299_v49 }
  0xaa   :  { %v137_v2 = vsel %vm134_vm15, %v136_v0, %v132_v61  ;;  %vm146_vm3 = vmor %vm144_vm1, %vm145_vm2 }
  0xab   :  { %v141_v57 = vsub.f32 1.0, %v140_v52  ;;  %v117_v59 = vsel %vm116_vm12, %v297_v39, %v113_v54  ;;  %v156_v5 = vmul.f32 %v137_v2, %v368_v13 }
  0xac   :  { %v122_v60 = vsel %vm119_vm13, %v121_v56, %v117_v59  ;;  %v214_v45 = vld [vmem:[%s447_s4] sm:$0x1] }
  0xad   :  { %v155_v62 = vmul.f32 %v122_v60, %v371_v15  ;;  %v142_v63 = vmul.f32 %v299_v49, %v141_v57  ;;  %v160_v9 = vsel %vm77_vm6, %v156_v5, %v368_v13  ;;  %v231_v48 = vld [vmem:[%s448_s5] sm:$0x1] }
  0xaf   :  { %v159_v1 = vsel %vm77_vm6, %v155_v62, %v371_v15  ;;  %v143_v3 = vadd.f32 %v299_v49, %v142_v63 }
  0xb0   :  { %273 = vmatmul.msk.f32.vlgmr.msra.gmra.mxu3 %vm164_vm7, %v159_v1 }
  0xb1   :  { %v147_v7 = vsel %vm146_vm3, %v299_v49, %v143_v3 }
  0xb2   :  { %v152_v10 = vsel %vm149_vm4, %v151_v8, %v147_v7 }
  0xb3   :  { %v157_v11 = vmul.f32 %v152_v10, %v374_v19 }
  0xb5   :  { %v161_v12 = vsel %vm77_vm6, %v157_v11, %v374_v19 }
  0xb8   :  { %274 = vmatmul.msk.f32.gmra.mxu3 %vm164_vm7, %v160_v9 }
  0xc0   :  { %275 = vmatmul.msk.f32.gmra.mxu3 %vm164_vm7, %v161_v12 }
 0x125   :  { %v198_v13 = vpop.f32.mrf.mxu1 }
 0x126   :  { %210 = vst.msk [vmem:[%s449_s3] sm:$0xff] %vm33_vm0, %v198_v13  ;;  %v232_v18 = vmul.f32 %v198_v13, %v198_v13  ;;  %v215_v21 = vsel %vm33_vm0, %v198_v13, 0.0 }
 0x128   :  { %v236_v25 = vsel %vm33_vm0, %v232_v18, 0.0 }
 0x133   :  { %v201_v15 = vpop.f32.mrf.mxu3 }
 0x134   :  { %211 = vst.msk [vmem:[%s449_s3 + $0x8] sm:$0xff] %vm33_vm0, %v201_v15  ;;  %v233_v17 = vmul.f32 %v201_v15, %v201_v15  ;;  %v216_v19 = vsel %vm33_vm0, %v201_v15, 0.0 }
 0x135   :  { %v217_v24 = vadd.f32 %v216_v19, %v215_v21 }
 0x136   :  { %v237_v22 = vsel %vm33_vm0, %v233_v17, 0.0 }
 0x137   :  { %v238_v27 = vadd.f32 %v237_v22, %v236_v25 }
 0x13b   :  { %v204_v16 = vpop.f32.mrf.mxu3 }
 0x13c   :  { %212 = vst.msk [vmem:[%s449_s3 + $0x10] sm:$0xff] %vm33_vm0, %v204_v16  ;;  %v234_v20 = vmul.f32 %v204_v16, %v204_v16  ;;  %v218_v23 = vsel %vm33_vm0, %v204_v16, 0.0 }
 0x13d   :  { %v219_v28 = vadd.f32 %v218_v23, %v217_v24 }
 0x13e   :  { %v239_v26 = vsel %vm33_vm0, %v234_v20, 0.0 }
 0x13f   :  { %v240_v32 = vadd.f32 %v239_v26, %v238_v27 }
 0x143   :  { %v207_v29 = vpop.f32.mrf.mxu3 }
 0x144   :  { %213 = vst.msk [vmem:[%s449_s3 + $0x18] sm:$0xff] %vm33_vm0, %v207_v29  ;;  %v220_v30 = vsel %vm33_vm0, %v207_v29, 0.0  ;;  %v235_v31 = vmul.f32 %v207_v29, %v207_v29 }
 0x145   :  { %v221_v33 = vadd.f32 %v220_v30, %v219_v28 }
 0x146   :  { %v241_v34 = vsel %vm33_vm0, %v235_v31, 0.0 }
 0x147   :  { %v222_v35 = vrot.slane %v221_v33, 4  ;;  %v242_v36 = vadd.f32 %v241_v34, %v240_v32 }
 0x149   :  { %v223_v37 = vadd.f32 %v222_v35, %v221_v33  ;;  %v243_v38 = vrot.slane %v242_v36, 4 }
 0x14b   :  { %v224_v39 = vrot.slane %v223_v37, 2  ;;  %v244_v40 = vadd.f32 %v243_v38, %v242_v36 }
 0x14d   :  { %v225_v41 = vadd.f32 %v224_v39, %v223_v37  ;;  %v245_v42 = vrot.slane %v244_v40, 2 }
 0x14f   :  { %v226_v43 = vrot.slane %v225_v41, 1  ;;  %v246_v44 = vadd.f32 %v245_v42, %v244_v40 }
 0x151   :  { %v227_v46 = vadd.f32 %v226_v43, %v225_v41  ;;  %v247_v47 = vrot.slane %v246_v44, 1 }
 0x153   :  { %v228_v49 = vadd.f32 %v227_v46, %v214_v45  ;;  %v248_v50 = vadd.f32 %v247_v47, %v246_v44 }
 0x155   :  { %230 = vst.msk [vmem:[%s447_s4] sm:$0x1] %vm21_vm5, %v228_v49  ;;  %v249_v51 = vadd.f32 %v248_v50, %v231_v48 }
 0x157   :  { %250 = vst.msk [vmem:[%s448_s5] sm:$0x1] %vm21_vm5, %v249_v51 }

// kernel: adapter_pallas.3
= control target key start
LH: loop header
LB: loop body
LE: loop exit
PB: predicated region body
PF: predicated region fallthrough
CT: control target
= control target key end

     0   :  { %s133_s0 = inlined_call_operand.vmem [shape: f32[32,40], index: 0, kind: input, shape index: {}]   ;;  %s134_s1 = inlined_call_operand.vmem [shape: f32[1,40], index: 1, kind: input, shape index: {}]   ;;  %s135_s2 = inlined_call_operand.vmem [shape: f32[1,40], index: 2, kind: input, shape index: {}]   ;;  %s136_s3 = inlined_call_operand.hbm [shape: f32[32,40], index: 3, kind: output, shape index: {}]  }
   0x1   :  { %v15_v0 = vld [vmem:[%s133_s0] sm:$0xff]  ;;  %v16_v3 = vld [vmem:[%s133_s0 + $0x8] sm:$0xff]  ;;  %v17_v6 = vld [vmem:[%s133_s0 + $0x10] sm:$0xff] }
   0x2   :  { %v61_v1 = vld [vmem:[%s134_s1] ss:$0 sm:$0xff]  ;;  %v18_v7 = vld [vmem:[%s133_s0 + $0x18] sm:$0xff] }
   0x3   :  { %v62_v2 = vld [vmem:[%s135_s2] ss:$0 sm:$0xff]  ;;  %v23_v4 = vmul.f32 %v61_v1, %v15_v0  ;;  %v24_v5 = vmul.f32 %v61_v1, %v16_v3 }
   0x4   :  { %8 = vsyncpa [#allocation3], 0  ;;  %vm35_vm0 = vcmask 326656   ;;  %v25_v8 = vmul.f32 %v61_v1, %v17_v6  ;;  %v26_v9 = vmul.f32 %v61_v1, %v18_v7  ;;  %s89_s1 = smov [#allocation2]   ;;  %s46_s26 = sshll.u32 %s136_s3, 4  ;;  %s47_s26 = int_to_ptr.hbm [resolvable:$true] %s46_s26 }
   0x5   :  { %s44_s2 = sshll.u32 %s89_s1, 4  ;;  %v31_v10 = vadd.f32 %v62_v2, %v23_v4  ;;  %v32_v11 = vadd.f32 %v62_v2, %v24_v5  ;;  %s90_s0 = smov 128   ;;  %s45_s2 = int_to_ptr.vmem [resolvable:$true] %s44_s2 }
   0x6   :  { %v33_v12 = vadd.f32 %v62_v2, %v25_v8  ;;  %v34_v13 = vadd.f32 %v62_v2, %v26_v9  ;;  %s91_s27 = smov 8  }
   0x7   :  { %36 = vst.msk [vmem:[#allocation2] sm:$0xff] %vm35_vm0, %v31_v10 }
   0x8   :  { %37 = vst.msk [vmem:[#allocation2 + $0x8] sm:$0xff] %vm35_vm0, %v32_v11 }
   0x9   :  { %38 = vst.msk [vmem:[#allocation2 + $0x10] sm:$0xff] %vm35_vm0, %v33_v12 }
   0xa   :  { %39 = vst.msk [vmem:[#allocation2 + $0x18] sm:$0xff] %vm35_vm0, %v34_v13 }
   0xb   :  { %52 = dma.vmem_to_hbm [thread:$0]  %s45_s2, 512, %s47_s26, [#allocation3], %s90_s0, %s90_s0, %s91_s27  }
   0xc   :  { %87 = dma.done.wait [#allocation3], 512  }
   0xd   :  { %88 = vsyncadd [#allocation3], 4294966784 }
   0xe   :  { %57 = vsyncpa [#allocation3], 1 }

</bundles_post_ra>
